<compile_context>
chip_gen: v7x
topology: tpu7x:2x2x1
jax: 0.10.0
libtpu: 0.0.40
codegen_flags: <defaults>
</compile_context>

<pallas_src>
import jax
import jax.numpy as jnp
from jax.experimental import pallas as pl
from jax.experimental.pallas import tpu as pltpu


def _round_up(x, m):
    return ((x + m - 1) // m) * m


def mlp_planner_kernel(xl_ref, xr_ref, w1l_ref, w1r_ref, b1_ref,
                       w2_ref, b2_ref, w3_ref, b3_ref, o_ref):
    # MXU operand dtype follows the stored weight dtype (f32 -> no-op casts;
    # bf16 -> single-pass MXU on v6e/v7x).  Accumulation is always f32.
    mxu_dtype = w1l_ref.dtype
    xl = xl_ref[...].astype(mxu_dtype)
    xr = xr_ref[...].astype(mxu_dtype)

    # Layer 1: fused concat -> Linear(4*n_track -> hidden) + ReLU
    #   [xL | xR] @ w1 == xL @ w1L + xR @ w1R
    h1 = (jnp.dot(xl, w1l_ref[...], preferred_element_type=jnp.float32)
          + jnp.dot(xr, w1r_ref[...], preferred_element_type=jnp.float32)
          + b1_ref[...])
    h1 = jnp.maximum(h1, 0.0).astype(mxu_dtype)

    # Layer 2: Linear(hidden -> hidden) + ReLU
    h2 = jnp.dot(h1, w2_ref[...], preferred_element_type=jnp.float32) + b2_ref[...]
    h2 = jnp.maximum(h2, 0.0).astype(mxu_dtype)

    # Layer 3: Linear(hidden -> out_pad=8)  (zero-padded cols 6..7)
    out = jnp.dot(h2, w3_ref[...], preferred_element_type=jnp.float32) + b3_ref[...]
    o_ref[...] = out.astype(o_ref.dtype)


def init_params(key, n_track=10, n_waypoints=3, hidden_dim=128,
                param_dtype=jnp.float32):
    """Deterministic init matching nn.Linear shapes (stored transposed: (in, out)).

    Weights are stored pre-split (w1L/w1R for the fused concat) and the last
    layer is zero-padded to 8 output lanes.  Biases stay f32 (added after the
    f32 accumulation); weights use `param_dtype` (f32 or bf16 for the MXU).
    """
    input_dim = 4 * n_track
    half_dim = 2 * n_track
    output_dim = n_waypoints * 2
    out_pad = max(8, _round_up(output_dim, 8))
    ks = jax.random.split(key, 6)

    def uniform(k, shape, fan_in):
        bound = 1.0 / jnp.sqrt(fan_in)
        return jax.random.uniform(k, shape, jnp.float32, -bound, bound)

    w1 = uniform(ks[0], (input_dim, hidden_dim), input_dim)
    b1 = uniform(ks[1], (1, hidden_dim), input_dim)
    w2 = uniform(ks[2], (hidden_dim, hidden_dim), hidden_dim)
    b2 = uniform(ks[3], (1, hidden_dim), hidden_dim)
    w3 = uniform(ks[4], (hidden_dim, output_dim), hidden_dim)
    b3 = uniform(ks[5], (1, output_dim), hidden_dim)

    w1l, w1r = w1[:half_dim], w1[half_dim:]
    w3p = jnp.zeros((hidden_dim, out_pad), jnp.float32).at[:, :output_dim].set(w3)
    b3p = jnp.zeros((1, out_pad), jnp.float32).at[:, :output_dim].set(b3)

    return (w1l.astype(param_dtype), w1r.astype(param_dtype), b1,
            w2.astype(param_dtype), b2,
            w3p.astype(param_dtype), b3p)


def mlp_planner_forward(track_left, track_right, params, n_waypoints=3,
                        tile_b=2048):
    """
    track_left:  (b, n_track, 2)
    track_right: (b, n_track, 2)
    Returns:     (b, n_waypoints, 2) float32
    """
    w1l, w1r, b1, w2, b2, w3p, b3p = params
    b, n_track = track_left.shape[0], track_left.shape[1]
    in_half = 2 * n_track
    hidden = w2.shape[0]
    out_pad = w3p.shape[1]
    out_dim = n_waypoints * 2

    # Free reshapes (views) — the concat itself is fused into the kernel.
    xl = track_left.reshape(b, in_half).astype(jnp.float32)
    xr = track_right.reshape(b, in_half).astype(jnp.float32)

    # Batch tile: large (amortize ~0.35 us/step pipeline overhead) but capped so
    # the grid keeps >= 2 steps when the batch allows it (v7x has 2 TCs/chip).
    b8 = max(8, _round_up(b, 8))
    half_b8 = max(8, _round_up(pl.cdiv(b, 2), 8))
    tb = min(tile_b, b8, half_b8)
    grid = (pl.cdiv(b, tb),)

    def row_spec(width):
        return pl.BlockSpec((tb, width), lambda i: (i, 0))

    def resident(shape):
        # Constant block index -> weight/bias stays resident in VMEM across grid.
        return pl.BlockSpec(shape, lambda i: (0, 0))

    flops = 2 * b * (in_half * hidden * 2 + hidden * hidden + hidden * out_pad)
    param_bytes = sum(int(p.size) * p.dtype.itemsize for p in params)
    bytes_accessed = 2 * b * in_half * 4 + b * out_pad * 4 + param_bytes

    out = pl.pallas_call(
        mlp_planner_kernel,
        out_shape=jax.ShapeDtypeStruct((b, out_pad), jnp.float32),
        grid=grid,
        in_specs=[
            row_spec(in_half),             # xL  (batch-streamed)
            row_spec(in_half),             # xR  (batch-streamed)
            resident((in_half, hidden)),   # w1L
            resident((in_half, hidden)),   # w1R
            resident((1, hidden)),         # b1
            resident((hidden, hidden)),    # w2
            resident((1, hidden)),         # b2
            resident((hidden, out_pad)),   # w3 (zero-padded to 8 lanes)
            resident((1, out_pad)),        # b3 (zero-padded to 8 lanes)
        ],
        out_specs=row_spec(out_pad),
        compiler_params=pltpu.CompilerParams(
            dimension_semantics=("parallel",),
            vmem_limit_bytes=32 * 1024 * 1024,
        ),
        cost_estimate=pl.CostEstimate(
            flops=flops, transcendentals=0, bytes_accessed=bytes_accessed),
    )(xl, xr, w1l, w1r, b1, w2, b2, w3p, b3p)

    return out[:, :out_dim].reshape(b, n_waypoints, 2)


def mlp_planner_ref(track_left, track_right, params, n_waypoints=3):
    """Pure-JAX (f32) reference for correctness checks."""
    w1l, w1r, b1, w2, b2, w3p, b3p = params
    b = track_left.shape[0]
    xl = track_left.reshape(b, -1).astype(jnp.float32)
    xr = track_right.reshape(b, -1).astype(jnp.float32)
    h1 = jnp.maximum(xl @ w1l.astype(jnp.float32) + xr @ w1r.astype(jnp.float32) + b1, 0.0)
    h2 = jnp.maximum(h1 @ w2.astype(jnp.float32) + b2, 0.0)
    out = h2 @ w3p.astype(jnp.float32) + b3p
    return out[:, : n_waypoints * 2].reshape(b, n_waypoints, 2)


if __name__ == "__main__":
    n_track = 10
    n_waypoints = 3
    hidden_dim = 128

    key = jax.random.PRNGKey(0)
    k_params, k_left, k_right = jax.random.split(key, 3)

    # --- f32 params, small batch (tight correctness check) ---
    batch = 2
    params = init_params(k_params, n_track, n_waypoints, hidden_dim)
    track_left = jax.random.normal(k_left, (batch, n_track, 2), jnp.float32)
    track_right = jax.random.normal(k_right, (batch, n_track, 2), jnp.float32)

    out = mlp_planner_forward(track_left, track_right, params, n_waypoints)
    out = jax.block_until_ready(out)
    ref = mlp_planner_ref(track_left, track_right, params, n_waypoints)
    assert out.shape == (batch, n_waypoints, 2), out.shape
    assert jnp.allclose(out, ref, atol=1e-4, rtol=1e-4), "f32 mismatch vs reference"

    # --- f32 params, multi-tile grid with a ragged edge tile ---
    batch2 = 50
    tl2 = jax.random.normal(jax.random.PRNGKey(1), (batch2, n_track, 2), jnp.float32)
    tr2 = jax.random.normal(jax.random.PRNGKey(2), (batch2, n_track, 2), jnp.float32)
    out2 = jax.block_until_ready(
        mlp_planner_forward(tl2, tr2, params, n_waypoints))
    ref2 = mlp_planner_ref(tl2, tr2, params, n_waypoints)
    assert out2.shape == (batch2, n_waypoints, 2), out2.shape
    assert jnp.allclose(out2, ref2, atol=1e-4, rtol=1e-4), "multi-tile mismatch"

    # --- bf16-weight MXU path (v6e/v7x recommendation); loose tolerance ---
    params_bf16 = init_params(k_params, n_track, n_waypoints, hidden_dim,
                              param_dtype=jnp.bfloat16)
    out3 = jax.block_until_ready(
        mlp_planner_forward(track_left, track_right, params_bf16, n_waypoints))
    assert out3.shape == (batch, n_waypoints, 2), out3.shape
    assert jnp.allclose(out3, ref, atol=5e-2, rtol=5e-2), "bf16 path mismatch"

    print("KERNEL_OK")
</pallas_src>

<mosaic_0001>
module attributes {stable_mosaic.version = 11 : i64} {
  func.func @mlp_planner_kernel(%arg0: i32, %arg1: memref<8x20xf32, #tpu.memory_space<vmem>>, %arg2: memref<8x20xf32, #tpu.memory_space<vmem>>, %arg3: memref<20x128xf32, #tpu.memory_space<vmem>>, %arg4: memref<20x128xf32, #tpu.memory_space<vmem>>, %arg5: memref<1x128xf32, #tpu.memory_space<vmem>>, %arg6: memref<128x128xf32, #tpu.memory_space<vmem>>, %arg7: memref<1x128xf32, #tpu.memory_space<vmem>>, %arg8: memref<128x8xf32, #tpu.memory_space<vmem>>, %arg9: memref<1x8xf32, #tpu.memory_space<vmem>>, %arg10: memref<8x8xf32, #tpu.memory_space<vmem>>) attributes {dimension_semantics = [#tpu.dimension_semantics<parallel>], iteration_bounds = array<i64: 1>, scalar_prefetch = 0 : i64, scratch_operands = 0 : i64, tpu.core_type = #tpu.core_type<tc>, window_params = [{transform_indices = @transform_0, window_bounds = array<i64: 8, 20>}, {transform_indices = @transform_1, window_bounds = array<i64: 8, 20>}, {pipeline_mode = #tpu.pipeline_mode<synchronous>, transform_indices = @transform_2, window_bounds = array<i64: 20, 128>}, {pipeline_mode = #tpu.pipeline_mode<synchronous>, transform_indices = @transform_3, window_bounds = array<i64: 20, 128>}, {pipeline_mode = #tpu.pipeline_mode<synchronous>, transform_indices = @transform_4, window_bounds = array<i64: 1, 128>}, {pipeline_mode = #tpu.pipeline_mode<synchronous>, transform_indices = @transform_5, window_bounds = array<i64: 128, 128>}, {pipeline_mode = #tpu.pipeline_mode<synchronous>, transform_indices = @transform_6, window_bounds = array<i64: 1, 128>}, {pipeline_mode = #tpu.pipeline_mode<synchronous>, transform_indices = @transform_7, window_bounds = array<i64: 128, 8>}, {pipeline_mode = #tpu.pipeline_mode<synchronous>, transform_indices = @transform_8, window_bounds = array<i64: 1, 8>}, {transform_indices = @transform_9, window_bounds = array<i64: 8, 8>}]} {
    %c0 = arith.constant 0 : index
    %c0_0 = arith.constant 0 : index
    %0 = vector.load %arg1[%c0, %c0_0] : memref<8x20xf32, #tpu.memory_space<vmem>>, vector<8x20xf32>
    %c0_1 = arith.constant 0 : index
    %c0_2 = arith.constant 0 : index
    %1 = vector.load %arg2[%c0_1, %c0_2] : memref<8x20xf32, #tpu.memory_space<vmem>>, vector<8x20xf32>
    %c0_3 = arith.constant 0 : index
    %c0_4 = arith.constant 0 : index
    %2 = vector.load %arg3[%c0_3, %c0_4] : memref<20x128xf32, #tpu.memory_space<vmem>>, vector<20x128xf32>
    %cst = arith.constant dense<0.000000e+00> : vector<8x128xf32>
    %3 = tpu.matmul %0, %2, %cst {dimension_numbers = #tpu.dot_dimension_numbers<[1], [0], [0], [1], [0, 0, 1, 1], [], []>} : vector<8x20xf32>, vector<20x128xf32>, vector<8x128xf32> -> vector<8x128xf32>
    %c0_5 = arith.constant 0 : index
    %c0_6 = arith.constant 0 : index
    %4 = vector.load %arg4[%c0_5, %c0_6] : memref<20x128xf32, #tpu.memory_space<vmem>>, vector<20x128xf32>
    %cst_7 = arith.constant dense<0.000000e+00> : vector<8x128xf32>
    %5 = tpu.matmul %1, %4, %cst_7 {dimension_numbers = #tpu.dot_dimension_numbers<[1], [0], [0], [1], [0, 0, 1, 1], [], []>} : vector<8x20xf32>, vector<20x128xf32>, vector<8x128xf32> -> vector<8x128xf32>
    %6 = arith.addf %3, %5 : vector<8x128xf32>
    %c0_8 = arith.constant 0 : index
    %c0_9 = arith.constant 0 : index
    %7 = vector.load %arg5[%c0_8, %c0_9] : memref<1x128xf32, #tpu.memory_space<vmem>>, vector<1x128xf32>
    %8 = vector.broadcast %7 : vector<1x128xf32> to vector<8x128xf32>
    %9 = arith.addf %6, %8 : vector<8x128xf32>
    %cst_10 = arith.constant 0.000000e+00 : f32
    %10 = vector.broadcast %cst_10 : f32 to vector<8x128xf32>
    %11 = arith.maximumf %9, %10 : vector<8x128xf32>
    %c0_11 = arith.constant 0 : index
    %c0_12 = arith.constant 0 : index
    %12 = vector.load %arg6[%c0_11, %c0_12] : memref<128x128xf32, #tpu.memory_space<vmem>>, vector<128x128xf32>
    %cst_13 = arith.constant dense<0.000000e+00> : vector<8x128xf32>
    %13 = tpu.matmul %11, %12, %cst_13 {dimension_numbers = #tpu.dot_dimension_numbers<[1], [0], [0], [1], [0, 0, 1, 1], [], []>} : vector<8x128xf32>, vector<128x128xf32>, vector<8x128xf32> -> vector<8x128xf32>
    %c0_14 = arith.constant 0 : index
    %c0_15 = arith.constant 0 : index
    %14 = vector.load %arg7[%c0_14, %c0_15] : memref<1x128xf32, #tpu.memory_space<vmem>>, vector<1x128xf32>
    %15 = vector.broadcast %14 : vector<1x128xf32> to vector<8x128xf32>
    %16 = arith.addf %13, %15 : vector<8x128xf32>
    %cst_16 = arith.constant 0.000000e+00 : f32
    %17 = vector.broadcast %cst_16 : f32 to vector<8x128xf32>
    %18 = arith.maximumf %16, %17 : vector<8x128xf32>
    %c0_17 = arith.constant 0 : index
    %c0_18 = arith.constant 0 : index
    %19 = vector.load %arg8[%c0_17, %c0_18] : memref<128x8xf32, #tpu.memory_space<vmem>>, vector<128x8xf32>
    %cst_19 = arith.constant dense<0.000000e+00> : vector<8x8xf32>
    %20 = tpu.matmul %18, %19, %cst_19 {dimension_numbers = #tpu.dot_dimension_numbers<[1], [0], [0], [1], [0, 0, 1, 1], [], []>} : vector<8x128xf32>, vector<128x8xf32>, vector<8x8xf32> -> vector<8x8xf32>
    %c0_20 = arith.constant 0 : index
    %c0_21 = arith.constant 0 : index
    %21 = vector.load %arg9[%c0_20, %c0_21] : memref<1x8xf32, #tpu.memory_space<vmem>>, vector<1x8xf32>
    %22 = vector.broadcast %21 : vector<1x8xf32> to vector<8x8xf32>
    %23 = arith.addf %20, %22 : vector<8x8xf32>
    %c0_22 = arith.constant 0 : index
    %c0_23 = arith.constant 0 : index
    %24 = vector.load %arg10[%c0_22, %c0_23] : memref<8x8xf32, #tpu.memory_space<vmem>>, vector<8x8xf32>
    tpu.vector_store %arg10[%c0_22, %c0_23], %23 {strides = array<i32>} : memref<8x8xf32, #tpu.memory_space<vmem>>, vector<8x8xf32>,
    return
  }
  func.func @transform_0(%arg0: i32) -> (i32, i32) {
    %c0_i32 = arith.constant 0 : i32
    %c0_i32_0 = arith.constant 0 : i32
    return %arg0, %c0_i32 : i32, i32
  }
  func.func @transform_1(%arg0: i32) -> (i32, i32) {
    %c0_i32 = arith.constant 0 : i32
    %c0_i32_0 = arith.constant 0 : i32
    return %arg0, %c0_i32 : i32, i32
  }
  func.func @transform_2(%arg0: i32) -> (i32, i32) {
    %c0_i32 = arith.constant 0 : i32
    %c0_i32_0 = arith.constant 0 : i32
    %c0_i32_1 = arith.constant 0 : i32
    return %c0_i32, %c0_i32_0 : i32, i32
  }
  func.func @transform_3(%arg0: i32) -> (i32, i32) {
    %c0_i32 = arith.constant 0 : i32
    %c0_i32_0 = arith.constant 0 : i32
    %c0_i32_1 = arith.constant 0 : i32
    return %c0_i32, %c0_i32_0 : i32, i32
  }
  func.func @transform_4(%arg0: i32) -> (i32, i32) {
    %c0_i32 = arith.constant 0 : i32
    %c0_i32_0 = arith.constant 0 : i32
    %c0_i32_1 = arith.constant 0 : i32
    return %c0_i32, %c0_i32_0 : i32, i32
  }
  func.func @transform_5(%arg0: i32) -> (i32, i32) {
    %c0_i32 = arith.constant 0 : i32
    %c0_i32_0 = arith.constant 0 : i32
    %c0_i32_1 = arith.constant 0 : i32
    return %c0_i32, %c0_i32_0 : i32, i32
  }
  func.func @transform_6(%arg0: i32) -> (i32, i32) {
    %c0_i32 = arith.constant 0 : i32
    %c0_i32_0 = arith.constant 0 : i32
    %c0_i32_1 = arith.constant 0 : i32
    return %c0_i32, %c0_i32_0 : i32, i32
  }
  func.func @transform_7(%arg0: i32) -> (i32, i32) {
    %c0_i32 = arith.constant 0 : i32
    %c0_i32_0 = arith.constant 0 : i32
    %c0_i32_1 = arith.constant 0 : i32
    return %c0_i32, %c0_i32_0 : i32, i32
  }
  func.func @transform_8(%arg0: i32) -> (i32, i32) {
    %c0_i32 = arith.constant 0 : i32
    %c0_i32_0 = arith.constant 0 : i32
    %c0_i32_1 = arith.constant 0 : i32
    return %c0_i32, %c0_i32_0 : i32, i32
  }
  func.func @transform_9(%arg0: i32) -> (i32, i32) {
    %c0_i32 = arith.constant 0 : i32
    %c0_i32_0 = arith.constant 0 : i32
    return %arg0, %c0_i32 : i32, i32
  }
}

</mosaic_0001>

<bundles_post_ra>
// kernel: tpu_custom_call.1
= control target key start
LH: loop header
LB: loop body
LE: loop exit
PB: predicated region body
PF: predicated region fallthrough
CT: control target
= control target key end

     0   :  { %14 = vsyncpa [#allocation3], 0  ;;  %s1045_s0 = inlined_call_operand.vmem [shape: f32[2,20], index: 0, kind: input, shape index: {}]   ;;  %s1046_s1 = inlined_call_operand.hbm [shape: f32[2,20], index: 1, kind: input, shape index: {}]   ;;  %s1047_s2 = inlined_call_operand.vmem [shape: f32[20,128], index: 2, kind: input, shape index: {}]   ;;  %s1048_s3 = inlined_call_operand.hbm [shape: f32[20,128], index: 3, kind: input, shape index: {}]   ;;  %s1049_s4 = inlined_call_operand.hbm [shape: f32[1,128], index: 4, kind: input, shape index: {}]   ;;  %s1050_s5 = inlined_call_operand.vmem [shape: f32[128,128], index: 5, kind: input, shape index: {}]   ;;  %s1051_s6 = inlined_call_operand.hbm [shape: f32[1,128], index: 6, kind: input, shape index: {}]   ;;  %s1052_s7 = inlined_call_operand.vmem [shape: f32[128,8], index: 7, kind: input, shape index: {}]   ;;  %s1053_s8 = inlined_call_operand.vmem [shape: f32[1,8], index: 8, kind: input, shape index: {}]   ;;  %s1054_s9 = inlined_call_operand.hbm [shape: f32[2,8], index: 9, kind: output, shape index: {}]  }
   0x1   :  { %15 = vsyncpa [#allocation6], 0 }
   0x2   :  { %16 = vsyncpa [#allocation9], 0 }
   0x3   :  { %17 = vsyncpa [#allocation4], 0 }
   0x4   :  { %24 = vsyncadd [#allocation3], 96  ;;  %s784_s30 = smov [#allocation5]   ;;  %s666_s13 = scalar_lea.hbm %s1048_s3, 384 }
   0x5   :  { %s39_s10 = sshll.u32 %s784_s30, 4  ;;  %p667_p0 = scmp.ne.s32.totalorder %s1048_s3, %s666_s13  ;;  %s40_s10 = int_to_ptr.vmem [resolvable:$true] %s39_s10 }
   0x6   :  { %p670_p1 = scmp.lt.u32.totalorder %s666_s13, %s1048_s3 }
   0x8   :  { %p672_p2 = pnand %p670_p1, %p667_p0 }
   0xa   :  { %675 = shalt.err (!%p672_p2)
}
   0xb   :  { %s676_s18 = scalar_lea.vmem %s40_s10, 384  ;;  %p681_p4 = scmp.lt.s32.totalorder %s40_s10, %s40_s10 }
   0xc   :  { %p677_p3 = scmp.ne.s32.totalorder %s40_s10, %s676_s18  ;;  %p682_p5 = scmp.lt.s32.totalorder %s676_s18, %s676_s18 }
   0xe   :  { %p683_p6 = por %p682_p5, %p681_p4 }
  0x10   :  { %p684_p7 = pnand %p683_p6, %p677_p3 }
  0x12   :  { %687 = shalt.err (!%p684_p7)
}
  0x13   :  { %s785_s19 = smov 128   ;;  %s786_s20 = smov 8  }
  0x14   :  { %45 = dma.hbm_to_vmem [thread:$0]  %s1048_s3, 384, %s40_s10, [#allocation6], %s785_s19, %s785_s19, %s786_s20  }
  0x15   :  { %s787_s23 = smov [#allocation2]   ;;  %s688_s27 = scalar_lea.hbm %s1046_s1, 32 }
  0x16   :  { %s25_s24 = sshll.u32 %s787_s23, 4  ;;  %p689_p8 = scmp.ne.s32.totalorder %s1046_s1, %s688_s27  ;;  %s26_s24 = int_to_ptr.vmem [resolvable:$true] %s25_s24 }
  0x17   :  { %p692_p9 = scmp.lt.u32.totalorder %s688_s27, %s1046_s1 }
  0x19   :  { %p694_p10 = pnand %p692_p9, %p689_p8 }
  0x1b   :  { %697 = shalt.err (!%p694_p10)
}
  0x1c   :  { %s698_s12 = scalar_lea.vmem %s26_s24, 32  ;;  %s702_s3 = scalar_lea.vmem %s26_s24, 128 }
  0x1d   :  { %p699_p11 = scmp.ne.s32.totalorder %s26_s24, %s698_s12  ;;  %p703_p12 = scmp.lt.s32.totalorder %s26_s24, %s26_s24 }
  0x1e   :  { %p704_p13 = scmp.lt.s32.totalorder %s702_s3, %s698_s12 }
  0x20   :  { %p705_p0 = por %p704_p13, %p703_p12 }
  0x22   :  { %p706_p1 = pnand %p705_p0, %p699_p11 }
  0x24   :  { %709 = shalt.err (!%p706_p1)
}
  0x25   :  { %s788_s10 = smov 32   ;;  %s789_s13 = smov 2  }
  0x26   :  { %31 = dma.hbm_to_vmem [thread:$0]  %s1046_s1, 32, %s26_s24, [#allocation3], %s788_s10, %s788_s10, %s789_s13  }
  0x27   :  { %s790_s16 = smov [#allocation7]   ;;  %s791_s18 = smov [#allocation8]  }
  0x28   :  { %s52_s17 = sshll.u32 %s790_s16, 4  ;;  %s64_s19 = sshll.u32 %s791_s18, 4  ;;  %s53_s17 = int_to_ptr.vmem [resolvable:$true] %s52_s17  ;;  %s65_s19 = int_to_ptr.vmem [resolvable:$true] %s64_s19 }
  0x29   :  { %s710_s22 = scalar_lea.hbm %s1049_s4, 16 }
  0x2a   :  { %p711_p2 = scmp.ne.s32.totalorder %s1049_s4, %s710_s22  ;;  %p714_p3 = scmp.lt.u32.totalorder %s710_s22, %s1049_s4 }
  0x2c   :  { %p716_p4 = pnand %p714_p3, %p711_p2 }
  0x2e   :  { %719 = shalt.err (!%p716_p4)
}
  0x2f   :  { %s720_s1 = scalar_lea.vmem %s53_s17, 16  ;;  %s724_s24 = scalar_lea.vmem %s53_s17, 32 }
  0x30   :  { %p721_p5 = scmp.ne.s32.totalorder %s53_s17, %s720_s1  ;;  %p725_p6 = scmp.lt.s32.totalorder %s53_s17, %s53_s17 }
  0x31   :  { %p726_p7 = scmp.lt.s32.totalorder %s724_s24, %s720_s1 }
  0x33   :  { %p727_p8 = por %p726_p7, %p725_p6 }
  0x35   :  { %p728_p9 = pnand %p727_p8, %p721_p5 }
  0x37   :  { %731 = shalt.err (!%p728_p9)
}
  0x38   :  { %55 = dma.hbm_to_vmem [thread:$0]  %s1049_s4, 16, %s53_s17, [#allocation6]  }
  0x39   :  { %s732_s12 = scalar_lea.hbm %s1051_s6, 16 }
  0x3a   :  { %p733_p10 = scmp.ne.s32.totalorder %s1051_s6, %s732_s12  ;;  %p736_p11 = scmp.lt.u32.totalorder %s732_s12, %s1051_s6 }
  0x3c   :  { %p738_p12 = pnand %p736_p11, %p733_p10 }
  0x3e   :  { %741 = shalt.err (!%p738_p12)
}
  0x3f   :  { %s742_s18 = scalar_lea.vmem %s65_s19, 16  ;;  %s746_s20 = scalar_lea.vmem %s65_s19, 32 }
  0x40   :  { %p743_p13 = scmp.ne.s32.totalorder %s65_s19, %s742_s18  ;;  %p747_p0 = scmp.lt.s32.totalorder %s65_s19, %s65_s19 }
  0x41   :  { %p748_p1 = scmp.lt.s32.totalorder %s746_s20, %s742_s18 }
  0x43   :  { %p749_p2 = por %p748_p1, %p747_p0 }
  0x45   :  { %p750_p3 = pnand %p749_p2, %p743_p13 }
  0x47   :  { %753 = shalt.err (!%p750_p3)
}
  0x48   :  { %67 = dma.hbm_to_vmem [thread:$0]  %s1051_s6, 16, %s65_s19, [#allocation9]  }
  0x49   :  { %776 = dma.done.wait [#allocation3], 128  }
  0x4a   :  { %777 = vsyncadd [#allocation3], 4294967168 }
  0x4b   :  { %778 = dma.done.wait [#allocation6], 400  }
  0x4c   :  { %779 = vsyncadd [#allocation6], 4294966896 }
  0x4d   :  { %780 = dma.done.wait [#allocation9], 16  }
  0x4e   :  { %781 = vsyncadd [#allocation9], 4294967280  ;;  %v792_v0 = vmov 0.0|0.0   ;;  %vm793_vm0 = vmmov 0   ;;  %v794_v1 = vmov 0.0   ;;  %v89_v2 = vld [vmem:[#allocation5] sm:$0xff] }
  0x4f   :  { %600 = vmatprep.subr.bf16.mxu0 %v792_v0  ;;  %603 = vmatprep.subr.bf16.mxu1 %v792_v0  ;;  %v90_v3 = vld [vmem:[#allocation5 + $0x8] sm:$0xff]  ;;  %v86_v4 = vld [vmem:[%s1047_s2] sm:$0xff]  ;;  %v87_v6 = vld [vmem:[%s1047_s2 + $0x8] sm:$0xff]  ;;  %vm96_vm1 = vcmask 1043456   ;;  %vm92_vm2 = vcmask 162816   ;;  %vm442_vm3 = vcmask 64512  }
  0x50   :  { %518 = vmatprep.mubr.msk.f32.mxu0 %vm793_vm0, %v794_v1  ;;  %527 = vmatprep.mubr.msk.f32.mxu1 %vm793_vm0, %v794_v1  ;;  %v601_v5 = vpack.c.bf16 %v90_v3, %v89_v2  ;;  %v604_v7 = vpack.c.bf16 %v87_v6, %v86_v4  ;;  %v255_v8 = vld [vmem:[%s1050_s5] sm:$0xff]  ;;  %v256_v9 = vld [vmem:[%s1050_s5 + $0x8] sm:$0xff]  ;;  %v91_v10 = vld [vmem:[#allocation5 + $0x10] sm:$0xf] }
  0x51   :  { %v88_v11 = vld [vmem:[%s1047_s2 + $0x10] sm:$0xf]  ;;  %v85_v12 = vld [vmem:[#allocation2] sm:$0xff]  ;;  %v607_v14 = vpack.c.bf16 %v256_v9, %v255_v8  ;;  %v258_v16 = vld [vmem:[%s1050_s5 + $0x18] sm:$0xff] }
  0x52   :  { %602 = vmatpush3.bf16.msra.mxu0 %v601_v5  ;;  %605 = vmatpush3.bf16.msra.mxu1 %v604_v7  ;;  %v84_v13 = vld [vmem:[%s1045_s0] sm:$0xff]  ;;  %v257_v15 = vld [vmem:[%s1050_s5 + $0x10] sm:$0xff]  ;;  %v260_v19 = vld [vmem:[%s1050_s5 + $0x28] sm:$0xff] }
  0x53   :  { %516 = vmatprep.subr.mxu0 %v794_v1  ;;  %525 = vmatprep.subr.mxu1 %v794_v1  ;;  %v610_v17 = vpack.c.bf16 %v258_v16, %v257_v15  ;;  %v259_v18 = vld [vmem:[%s1050_s5 + $0x20] sm:$0xff]  ;;  %v261_v21 = vld [vmem:[%s1050_s5 + $0x30] sm:$0xff]  ;;  %v262_v22 = vld [vmem:[%s1050_s5 + $0x38] sm:$0xff] }
  0x54   :  { %v613_v20 = vpack.c.bf16 %v260_v19, %v259_v18  ;;  %v616_v23 = vpack.c.bf16 %v262_v22, %v261_v21  ;;  %v263_v24 = vld [vmem:[%s1050_s5 + $0x40] sm:$0xff]  ;;  %v264_v25 = vld [vmem:[%s1050_s5 + $0x48] sm:$0xff]  ;;  %v265_v27 = vld [vmem:[%s1050_s5 + $0x50] sm:$0xff] }
  0x55   :  { %v619_v26 = vpack.c.bf16 %v264_v25, %v263_v24  ;;  %v266_v28 = vld [vmem:[%s1050_s5 + $0x58] sm:$0xff]  ;;  %v267_v30 = vld [vmem:[%s1050_s5 + $0x60] sm:$0xff]  ;;  %v268_v31 = vld [vmem:[%s1050_s5 + $0x68] sm:$0xff] }
  0x56   :  { %517 = vmatpush3.msk.msra.mxu0 %vm96_vm1, %v91_v10  ;;  %526 = vmatpush3.msk.msra.mxu1 %vm96_vm1, %v88_v11  ;;  %v622_v29 = vpack.c.bf16 %v266_v28, %v265_v27  ;;  %v625_v32 = vpack.c.bf16 %v268_v31, %v267_v30  ;;  %v269_v33 = vld [vmem:[%s1050_s5 + $0x70] sm:$0xff]  ;;  %v270_v34 = vld [vmem:[%s1050_s5 + $0x78] sm:$0xff]  ;;  %v349_v36 = vld [vmem:[%s1052_s7] sm:$0xff] }
  0x57   :  { %519 = vmatmul.mubr.msk.f32.vlgmr.msra.gmra.mrb[0].mxu0 %vm92_vm2, %v85_v12  ;;  %528 = vmatmul.mubr.msk.f32.vlgmr.msra.gmra.mrb[0].mxu1 %vm92_vm2, %v84_v13  ;;  %v628_v35 = vpack.c.bf16 %v270_v34, %v269_v33  ;;  %v350_v37 = vld [vmem:[%s1052_s7 + $0x8] sm:$0xff]  ;;  %v351_v38 = vld [vmem:[%s1052_s7 + $0x10] sm:$0xff]  ;;  %v352_v40 = vld [vmem:[%s1052_s7 + $0x18] sm:$0xff] }
  0x58   :  { %606 = vmatprep.subr.bf16.mxu0 %v792_v0  ;;  %562 = vmatprep.mubr.msk.f32.mxu0 %vm793_vm0, %v794_v1  ;;  %v631_v39 = vpack.c.bf16 %v350_v37, %v349_v36  ;;  %v634_v41 = vpack.c.bf16 %v352_v40, %v351_v38  ;;  %v353_v42 = vld [vmem:[%s1052_s7 + $0x20] sm:$0xff]  ;;  %v354_v43 = vld [vmem:[%s1052_s7 + $0x28] sm:$0xff]  ;;  %v355_v45 = vld [vmem:[%s1052_s7 + $0x30] sm:$0xff] }
  0x59   :  { %608 = vmatpush3.bf16.msra.mxu0 %v607_v14  ;;  %630 = vmatprep.subr.bf16.mxu1 %v792_v0  ;;  %v637_v44 = vpack.c.bf16 %v354_v43, %v353_v42  ;;  %v356_v46 = vld [vmem:[%s1052_s7 + $0x38] sm:$0xff]  ;;  %v357_v48 = vld [vmem:[%s1052_s7 + $0x40] sm:$0xff]  ;;  %v358_v49 = vld [vmem:[%s1052_s7 + $0x48] sm:$0xff] }
  0x5a   :  { %609 = vmatprep.subr.bf16.mxu0 %v792_v0  ;;  %597 = vmatprep.mubr.msk.f32.mxu1 %vm793_vm0, %v794_v1  ;;  %v640_v47 = vpack.c.bf16 %v356_v46, %v355_v45  ;;  %v643_v50 = vpack.c.bf16 %v358_v49, %v357_v48  ;;  %v359_v51 = vld [vmem:[%s1052_s7 + $0x50] sm:$0xff]  ;;  %v360_v52 = vld [vmem:[%s1052_s7 + $0x58] sm:$0xff]  ;;  %v361_v54 = vld [vmem:[%s1052_s7 + $0x60] sm:$0xff] }
  0x5b   :  { %632 = vmatpush3.bf16.msra.mxu1 %v631_v39  ;;  %v646_v53 = vpack.c.bf16 %v360_v52, %v359_v51  ;;  %v362_v55 = vld [vmem:[%s1052_s7 + $0x68] sm:$0xff]  ;;  %v467_v59 = vld [vmem:[#allocation7] ss:$0 sm:$0xff]  ;;  %v363_v2 = vld [vmem:[%s1052_s7 + $0x70] sm:$0xff] }
  0x5c   :  { %633 = vmatprep.subr.bf16.mxu1 %v792_v0  ;;  %v649_v56 = vpack.c.bf16 %v362_v55, %v361_v54  ;;  %v364_v3 = vld [vmem:[%s1052_s7 + $0x78] sm:$0xff]  ;;  %v469_v9 = vld [vmem:[%s1053_s8] ss:$0 sm:$0xff] }
  0x5d   :  { %611 = vmatpush3.bf16.msra.mxu0 %v610_v17  ;;  %v652_v4 = vpack.c.bf16 %v364_v3, %v363_v2 }
  0x5e   :  { %612 = vmatprep.subr.bf16.mxu0 %v792_v0 }
  0x5f   :  { %635 = vmatpush3.bf16.msra.mxu1 %v634_v41 }
  0x60   :  { %636 = vmatprep.subr.bf16.mxu1 %v792_v0 }
  0x61   :  { %614 = vmatpush3.bf16.msra.mxu0 %v613_v20 }
  0x62   :  { %615 = vmatprep.subr.bf16.mxu0 %v792_v0 }
  0x63   :  { %638 = vmatpush3.bf16.msra.mxu1 %v637_v44 }
  0x64   :  { %639 = vmatprep.subr.bf16.mxu1 %v792_v0 }
  0x65   :  { %617 = vmatpush3.bf16.msra.mxu0 %v616_v23 }
  0x66   :  { %618 = vmatprep.subr.bf16.mxu0 %v792_v0 }
  0x67   :  { %641 = vmatpush3.bf16.msra.mxu1 %v640_v47 }
  0x68   :  { %642 = vmatprep.subr.bf16.mxu1 %v792_v0 }
  0x69   :  { %620 = vmatpush3.bf16.msra.mxu0 %v619_v26 }
  0x6a   :  { %621 = vmatprep.subr.bf16.mxu0 %v792_v0 }
  0x6b   :  { %644 = vmatpush3.bf16.msra.mxu1 %v643_v50 }
  0x6c   :  { %645 = vmatprep.subr.bf16.mxu1 %v792_v0 }
  0x6d   :  { %623 = vmatpush3.bf16.msra.mxu0 %v622_v29 }
  0x6e   :  { %624 = vmatprep.subr.bf16.mxu0 %v792_v0 }
  0x6f   :  { %647 = vmatpush3.bf16.msra.mxu1 %v646_v53 }
  0x70   :  { %648 = vmatprep.subr.bf16.mxu1 %v792_v0 }
  0x71   :  { %626 = vmatpush3.bf16.msra.mxu0 %v625_v32 }
  0x72   :  { %627 = vmatprep.subr.bf16.mxu0 %v792_v0 }
  0x73   :  { %650 = vmatpush3.bf16.msra.mxu1 %v649_v56 }
  0x74   :  { %651 = vmatprep.subr.bf16.mxu1 %v792_v0  ;;  %v468_v0 = vld [vmem:[#allocation8] ss:$0 sm:$0xff] }
  0x75   :  { %629 = vmatpush3.bf16.msra.mxu0 %v628_v35 }
  0x77   :  { %653 = vmatpush3.bf16.msra.mxu1 %v652_v4 }
 0x12a   :  { %v166_v57 = vpop.f32.mrb[0].mxu0  ;;  %v242_v58 = vpop.f32.mrb[0].mxu1 }
 0x12b   :  { %v520_v60 = vpop.f32.mrb[1].mxu0  ;;  %v243_v61 = vadd.f32 %v242_v58, %v166_v57  ;;  %v529_v62 = vpop.f32.mrb[1].mxu1 }
 0x12d   :  { %v253_v63 = vadd.f32 %v467_v59, %v243_v61 }
 0x12f   :  { %v254_v1 = vmax.f32 %v253_v63, 0.0 }
 0x131   :  { %563 = vmatmul.mubr.f32.vlgmr.msra.gmra.mrb[2].mxu0 %v254_v1 }
 0x204   :  { %v344_v5 = vpop.f32.mrb[2].mxu0 }
 0x205   :  { %v345_v6 = vadd.f32 %v468_v0, %v344_v5  ;;  %v564_v7 = vpop.f32.mrb[3].mxu0 }
 0x207   :  { %v348_v8 = vmax.f32 %v345_v6, 0.0 }
 0x209   :  { %598 = vmatmul.mubr.f32.vlgmr.msra.gmra.mrb[2].mxu1 %v348_v8 }
 0x2dc   :  { %v438_v10 = vpop.f32.mrb[2].mxu1 }
 0x2dd   :  { %v439_v11 = vadd.f32 %v469_v9, %v438_v10  ;;  %v599_v12 = vpop.f32.mrb[3].mxu1 }
 0x2df   :  { %443 = vst.msk [vmem:[#allocation10] sm:$0xff] %vm442_vm3, %v439_v11 }
 0x2e0   :  { %448 = vsyncadd [#allocation4], 96  ;;  %s795_s5 = smov [#allocation10]  }
 0x2e1   :  { %s449_s7 = sshll.u32 %s795_s5, 4  ;;  %s450_s7 = int_to_ptr.vmem [resolvable:$true] %s449_s7 }
 0x2e2   :  { %s754_s4 = scalar_lea.vmem %s450_s7, 32  ;;  %s758_s17 = scalar_lea.vmem %s450_s7, 128 }
 0x2e3   :  { %p755_p4 = scmp.ne.s32.totalorder %s450_s7, %s754_s4  ;;  %p759_p5 = scmp.lt.s32.totalorder %s450_s7, %s450_s7 }
 0x2e4   :  { %p760_p6 = scmp.lt.s32.totalorder %s758_s17, %s754_s4 }
 0x2e6   :  { %p761_p7 = por %p760_p6, %p759_p5 }
 0x2e8   :  { %p762_p8 = pnand %p761_p7, %p755_p4 }
 0x2ea   :  { %765 = shalt.err (!%p762_p8)
}
 0x2eb   :  { %s766_s8 = scalar_lea.hbm %s1054_s9, 32 }
 0x2ec   :  { %p767_p9 = scmp.ne.s32.totalorder %s1054_s9, %s766_s8  ;;  %p770_p10 = scmp.lt.u32.totalorder %s766_s8, %s1054_s9 }
 0x2ee   :  { %p772_p11 = pnand %p770_p10, %p767_p9 }
 0x2f0   :  { %775 = shalt.err (!%p772_p11)
}
 0x2f1   :  { %455 = dma.vmem_to_hbm [thread:$0]  %s450_s7, 32, %s1054_s9, [#allocation4], %s788_s10, %s788_s10, %s789_s13  }
 0x2f2   :  { %782 = dma.done.wait [#allocation4], 128  }
 0x2f3   :  { %783 = vsyncadd [#allocation4], 4294967168 }
 0x2f4   :  { %459 = vsyncpa [#allocation3], 1 }
 0x2f5   :  { %460 = vsyncpa [#allocation6], 1 }
 0x2f6   :  { %461 = vsyncpa [#allocation9], 1 }
 0x2f7   :  { %462 = vsyncpa [#allocation4], 1 }

</bundles_post_ra>
